<compile_context>
chip_gen: v6e
topology: v6e:2x2x1
jax: 0.10.0
libtpu: 0.0.40
codegen_flags: <defaults>
</compile_context>

<pallas_src>
import jax
import jax.numpy as jnp
import numpy as np
from jax import lax
from jax.experimental import pallas as pl
from jax.experimental.pallas import tpu as pltpu


def _ce_kernel(logits_ref, tgt_ref, loss_ref):
    """Per-example cross entropy with ignore_index=-1.

    logits_ref: (C, tile_n) block (classes on sublanes, batch on lanes).
    tgt_ref:    (1, tile_n) int32 targets.
    loss_ref:   (1, tile_n) f32 per-example loss (lane-dense store).
    """
    logits = logits_ref[...].astype(jnp.float32)                       # (C, tn)
    tgt = tgt_ref[...]                                                  # (1, tn)

    m = jnp.max(logits, axis=0, keepdims=True)                          # (1, tn)
    shifted = logits - m
    lse = jnp.log(jnp.sum(jnp.exp(shifted), axis=0, keepdims=True))     # (1, tn)

    C, tn = logits.shape
    row = lax.broadcasted_iota(jnp.int32, (C, tn), 0)
    # Select-then-reduce (no f32 one-hot temporary, no extra vmul).
    tgt_logit = jnp.sum(jnp.where(row == tgt, shifted, 0.0),
                        axis=0, keepdims=True)                          # (1, tn)

    loss = lse - tgt_logit                                              # (1, tn)
    valid = tgt != -1                                                   # ignore_index
    loss_ref[...] = jnp.where(valid, loss, 0.0)


def _pick_tile_n(N):
    """Largest lane-dense tile that still leaves >= 2 grid steps (so v7x's
    second TensorCore gets work); falls back to 128."""
    for cand in (2048, 1024, 512, 256):
        if N % cand == 0 and N // cand >= 2:
            return cand
    return 128


def ohem_loss(outputs, targets, rate, *, tile_n=None):
    """outputs: [N, C] logits (any float dtype), targets: [N] int class ids
    (-1 = ignore), rate: static Python float. Returns scalar f32 matching
    OHEMLoss.forward."""
    N, C = outputs.shape
    assert N % 128 == 0, "N must be a multiple of 128 here"
    if tile_n is None:
        tile_n = _pick_tile_n(N)
    assert N % tile_n == 0 and tile_n % 128 == 0

    # Batch-on-lanes: (C, N) so every vreg is fully packed even for small C.
    # (One cheap XLA transpose in the wrapper; no dtype cast here — the kernel
    # casts in-register, so bf16/fp8 logits are read at native width.)
    logits_t = jnp.transpose(outputs)                     # (C, N)
    tgt2d = targets.astype(jnp.int32).reshape(1, N)

    # VMEM budget: double-buffered logits block + small target/output blocks,
    # with headroom; capped so it stays safe on v7x's 64 MiB VMEM.
    itemsize = jnp.dtype(outputs.dtype).itemsize
    block_bytes = C * tile_n * itemsize
    vmem_bytes = int(min(48 << 20, max(16 << 20, 4 * block_bytes + (1 << 20))))

    per_example = pl.pallas_call(
        _ce_kernel,
        out_shape=jax.ShapeDtypeStruct((1, N), jnp.float32),
        grid=(N // tile_n,),
        in_specs=[pl.BlockSpec((C, tile_n), lambda i: (0, i)),
                  pl.BlockSpec((1, tile_n), lambda i: (0, i))],
        out_specs=pl.BlockSpec((1, tile_n), lambda i: (0, i)),
        compiler_params=pltpu.CompilerParams(
            dimension_semantics=("parallel",),
            vmem_limit_bytes=vmem_bytes),
    )(logits_t, tgt2d).reshape(N)

    # keep_num is static (rate and N are static), mirroring the host-side
    # int(batch_size * rate) in PyTorch; guarded against divide-by-zero.
    keep_num = max(1, min(N, int(N * rate)))

    # TODO(synk): descending sort / top-k selection has no Mosaic/Pallas TPU
    # primitive; use XLA's fused top_k(keep_num) in the glue (sum of the top-k
    # values is tie-order invariant, so this matches torch.sort + slice).
    if keep_num < N:
        kept = lax.top_k(per_example, keep_num)[0]
    else:
        kept = per_example
    return jnp.sum(kept) / keep_num


def _reference_loss(outputs, targets, rate):
    """Pure-JAX reference mirroring the PyTorch OHEMLoss (ignore_index=-1)."""
    N, C = outputs.shape
    logp = jax.nn.log_softmax(outputs.astype(jnp.float32), axis=-1)
    valid = targets != -1
    safe_t = jnp.where(valid, targets, 0).astype(jnp.int32)
    per = -jnp.take_along_axis(logp, safe_t[:, None], axis=1)[:, 0]
    per = jnp.where(valid, per, 0.0)
    keep_num = max(1, min(N, int(N * rate)))
    vals = lax.top_k(per, keep_num)[0]
    return vals.sum() / keep_num


if __name__ == "__main__":
    # OHEMLoss.__init__ has no learnable parameters (weight is unused).
    key = jax.random.PRNGKey(0)
    k1, k2, k3 = jax.random.split(key, 3)
    N, C = 256, 32               # batch of 256 examples, 32 classes
    rate = 0.7                   # keep_num = 179 < N -> exercises the OHEM path

    outputs = jax.random.normal(k1, (N, C), dtype=jnp.float32)
    targets = jax.random.randint(k2, (N,), 0, C, dtype=jnp.int32)
    ignore = jax.random.bernoulli(k3, p=0.1, shape=(N,))
    targets = jnp.where(ignore, -1, targets)    # some ignore_index entries

    loss = jax.block_until_ready(ohem_loss(outputs, targets, rate))
    ref = jax.block_until_ready(_reference_loss(outputs, targets, rate))
    assert np.allclose(np.asarray(loss), np.asarray(ref), rtol=1e-5, atol=1e-5), (
        float(loss), float(ref))

    print("KERNEL_OK")
</pallas_src>

<mosaic_0001>
module attributes {stable_mosaic.version = 11 : i64} {
  func.func @_ce_kernel(%arg0: i32, %arg1: memref<32x128xf32, #tpu.memory_space<vmem>>, %arg2: memref<1x128xi32, #tpu.memory_space<vmem>>, %arg3: memref<1x128xf32, #tpu.memory_space<vmem>>) attributes {dimension_semantics = [#tpu.dimension_semantics<parallel>], iteration_bounds = array<i64: 2>, scalar_prefetch = 0 : i64, scratch_operands = 0 : i64, tpu.core_type = #tpu.core_type<tc>, window_params = [{transform_indices = @transform_0, window_bounds = array<i64: 32, 128>}, {transform_indices = @transform_1, window_bounds = array<i64: 1, 128>}, {transform_indices = @transform_2, window_bounds = array<i64: 1, 128>}]} {
    %c0 = arith.constant 0 : index
    %c0_0 = arith.constant 0 : index
    %0 = vector.load %arg1[%c0, %c0_0] : memref<32x128xf32, #tpu.memory_space<vmem>>, vector<32x128xf32>
    %c0_1 = arith.constant 0 : index
    %c0_2 = arith.constant 0 : index
    %1 = vector.load %arg2[%c0_1, %c0_2] : memref<1x128xi32, #tpu.memory_space<vmem>>, vector<1x128xi32>
    %cst = arith.constant dense<0xFF800000> : vector<128xf32>
    %2 = vector.multi_reduction <maximumf>, %0, %cst [0] : vector<32x128xf32> to vector<128xf32>
    %3 = vector.shape_cast %2 : vector<128xf32> to vector<1x128xf32>
    %4 = vector.broadcast %3 : vector<1x128xf32> to vector<32x128xf32>
    %5 = arith.subf %0, %4 : vector<32x128xf32>
    %6 = math.exp %5 : vector<32x128xf32>
    %cst_3 = arith.constant dense<0.000000e+00> : vector<128xf32>
    %7 = vector.multi_reduction <add>, %6, %cst_3 [0] : vector<32x128xf32> to vector<128xf32>
    %8 = vector.shape_cast %7 : vector<128xf32> to vector<1x128xf32>
    %9 = math.log %8 : vector<1x128xf32>
    %10 = tpu.iota {dimensions = array<i32: 0>} : vector<32x128xi32>
    %11 = vector.broadcast %1 : vector<1x128xi32> to vector<32x128xi32>
    %12 = arith.cmpi eq, %10, %11 : vector<32x128xi32>
    %cst_4 = arith.constant 0.000000e+00 : f32
    %13 = vector.broadcast %cst_4 : f32 to vector<32x128xf32>
    %14 = arith.select %12, %5, %13 : vector<32x128xi1>, vector<32x128xf32>
    %cst_5 = arith.constant dense<0.000000e+00> : vector<128xf32>
    %15 = vector.multi_reduction <add>, %14, %cst_5 [0] : vector<32x128xf32> to vector<128xf32>
    %16 = vector.shape_cast %15 : vector<128xf32> to vector<1x128xf32>
    %17 = arith.subf %9, %16 : vector<1x128xf32>
    %c-1_i32 = arith.constant -1 : i32
    %18 = vector.broadcast %c-1_i32 : i32 to vector<1x128xi32>
    %19 = arith.cmpi ne, %1, %18 : vector<1x128xi32>
    %cst_6 = arith.constant 0.000000e+00 : f32
    %20 = vector.broadcast %cst_6 : f32 to vector<1x128xf32>
    %21 = arith.select %19, %17, %20 : vector<1x128xi1>, vector<1x128xf32>
    %c0_7 = arith.constant 0 : index
    %c0_8 = arith.constant 0 : index
    %22 = vector.load %arg3[%c0_7, %c0_8] : memref<1x128xf32, #tpu.memory_space<vmem>>, vector<1x128xf32>
    tpu.vector_store %arg3[%c0_7, %c0_8], %21 {strides = array<i32>} : memref<1x128xf32, #tpu.memory_space<vmem>>, vector<1x128xf32>,
    return
  }
  func.func @transform_0(%arg0: i32) -> (i32, i32) {
    %c0_i32 = arith.constant 0 : i32
    %c0_i32_0 = arith.constant 0 : i32
    return %c0_i32, %arg0 : i32, i32
  }
  func.func @transform_1(%arg0: i32) -> (i32, i32) {
    %c0_i32 = arith.constant 0 : i32
    %c0_i32_0 = arith.constant 0 : i32
    return %c0_i32, %arg0 : i32, i32
  }
  func.func @transform_2(%arg0: i32) -> (i32, i32) {
    %c0_i32 = arith.constant 0 : i32
    %c0_i32_0 = arith.constant 0 : i32
    return %c0_i32, %arg0 : i32, i32
  }
}

</mosaic_0001>

<bundles_post_ra>
// kernel: tpu_custom_call.1
= control target key start
LH: loop header
LB: loop body
LE: loop exit
PB: predicated region body
PF: predicated region fallthrough
CT: control target
= control target key end

     0   :  { %7 = vsyncpa [#allocation3], 0  ;;  %s778_s0 = inlined_call_operand.hbm [shape: f32[32,256], index: 0, kind: input, shape index: {}]   ;;  %s779_s1 = inlined_call_operand.hbm [shape: s32[1,256], index: 1, kind: input, shape index: {}]   ;;  %s780_s2 = inlined_call_operand.hbm [shape: f32[1,256], index: 2, kind: output, shape index: {}]  }
   0x1   :  { %9 = vsyncpa [#allocation3 + $0x1], 0 }
   0x2   :  { %10 = vsyncpa [#allocation6], 0 }
   0x3   :  { %12 = vsyncpa [#allocation6 + $0x1], 0 }
   0x4   :  { %13 = vsyncpa [#allocation4], 0 }
   0x5   :  { %15 = vsyncpa [#allocation4 + $0x1], 0  ;;  %s582_s9 = smov 0   ;;  %s584_s10 = smov 0  }
   0x6   :  { %s586_s11 = smov 0   ;;  %s588_s12 = smov 0  }
   0x7 LB: > { %s603_s13 = sadd.s32 4294967295, %s559_s12   ;;  %s360_s14 = sadd.s32 4294967294, %s559_s12   ;;  %s559_s12 = sphi %s588_s12, %s798_s12   ;;  %s555_s11 = sphi %s586_s11, %s797_s11   ;;  %s551_s10 = sphi %s584_s10, %s796_s10   ;;  %s547_s9 = sphi %s582_s9, %s795_s9  }
   0x8   : > { %s607_s15 = sadd.s32 1, %s559_s12   ;;  %s28_s16 = sadd.s32 1, %s555_s11 }
   0x9   : > { %s25_s17 = ssub.s32 %s559_s12, %s607_s15  ;;  %p35_p0 = scmp.ne.s32.totalorder %s555_s11, %s551_s10 }
   0xa   : > { %p26_p1 = scmp.eq.s32.totalorder %s25_s17, 0  ;;  %p36_p2 = scmp.eq.s32.totalorder %s559_s12, 0 }
   0xb   : > { %p41_p3 = scmp.ne.s32.totalorder %s551_s10, %s547_s9  ;;  %p42_p4 = scmp.eq.s32.totalorder %s603_s13, 0 }
   0xc   : > { %s619_s18 = scalar_select %p26_p1, %s555_s11, %s28_s16  }
   0xd   : > { %p621_p5 = por %p36_p2, %p35_p0  ;;  %p625_p6 = por %p42_p4, %p41_p3 }
   0xe   : > { %p91_p7 = scmp.eq.s32.totalorder %s603_s13, 1  ;;  %p97_p8 = scmp.eq.s32.totalorder %s360_s14, 1 }
   0xf   : > { %s784_s20 = scalar_select %p625_p6, 1, 0 }
  0x10   : > { %p388_p10 = scmp.lt.s32.totalorder %s559_s12, 2  ;;  %p632_p11 = por %p91_p7, %p35_p0 }
  0x11   : > { %p636_p12 = por %p97_p8, %p41_p3  ;;  %s641_s23 = sand.u32 1, %s555_s11  }
  0x12   : > { %s785_s21 = scalar_select %p632_p11, 1, 0 }
  0x13   : > { %s786_s22 = scalar_select %p636_p12, 1, 0 }
  0x14   : > { %s364_s24 = sshll.u32 %s559_s12, 7  ;;  %s363_s25 = sshll.u32 %s641_s23, 5 }
  0x15   : > { %s648_s28 = scalar_lea.hbm %s778_s0, %s364_s24  ;;  %s121_s29 = scalar_lea.vmem [#allocation2], %s363_s25 }
  0x16   : > { %s127_s30 = sshll.u32 %s121_s29, 4  ;;  %p652_p13 = pnand %p388_p10, %p621_p5  ;;  %s656_s30 = int_to_ptr.vmem [resolvable:$true] %s127_s30 }
  0x17   : > { %s118_s4 = scalar_lea.sflag [#allocation3], %s641_s23  ;;  %s435_s5 = scalar_lea.hbm %s648_s28, 512 }
  0x18   : > { %p436_p1 = scmp.ne.s32.totalorder %s648_s28, %s435_s5  ;;  %p437_p2 = pneg %p652_p13 }
  0x19   : > { %s440_s8 = scalar_lea.hbm %s778_s0, 1024  ;;  %p441_p5 = scmp.lt.s32.totalorder %s648_s28, %s778_s0 }
  0x1a   : > { %p438_p3 = pnand %p437_p2, %p436_p1  ;;  %p442_p7 = scmp.lt.s32.totalorder %s440_s8, %s435_s5 }
  0x1c   : > { %p439_p4 = pneg %p438_p3  ;;  %p443_p8 = por %p442_p7, %p441_p5 }
  0x1e   : > { %p444_p10 = pnand %p443_p8, %p439_p4 }
  0x20   : > { %447 = shalt.err (!%p444_p10)
}
  0x21   : > { %s448_s17 = scalar_lea.vmem %s656_s30, 512  ;;  %s561_s19 = smov [#allocation2]  }
  0x22   : > { %p449_p9 = scmp.ne.s32.totalorder %s656_s30, %s448_s17  ;;  %s453_s24 = sshll.u32 %s561_s19, 4  ;;  %s454_s24 = int_to_ptr.vmem [resolvable:$false] %s453_s24 }
  0x23   : > { %s455_s25 = scalar_lea.vmem %s454_s24, 1024  ;;  %p456_p0 = scmp.lt.s32.totalorder %s656_s30, %s454_s24 }
  0x24   : > { %p451_p1 = pnand %p449_p9, %p437_p2  ;;  %p457_p12 = scmp.lt.s32.totalorder %s455_s25, %s448_s17 }
  0x26   : > { %p452_p3 = pneg %p451_p1  ;;  %p458_p11 = por %p457_p12, %p456_p0 }
  0x28   : > { %p459_p5 = pnand %p458_p11, %p452_p3 }
  0x2a   : > { %462 = shalt.err (!%p459_p5)
}
  0x2b   : > { %s562_s26 = smov 256   ;;  %s563_s27 = smov 128  }
  0x2c   : > { %s564_s29 = smov 8   ;;  %p152_p9 = scmp.lt.s32.totalorder %s559_s12, 3 }
  0x2d   : > { %380 = dma.hbm_to_vmem [thread:$0]  (!%p652_p13), %s648_s28, 512, %s656_s30, %s118_s4, %s562_s26, %s563_s27, %s564_s29  }
  0x2e   : > { %s365_s5 = sshll.u32 %s559_s12, 4  ;;  %p788_p11 = scmp.ge.s32.totalorder %s559_s12, 1 }
  0x2f   : > { %s697_s14 = scalar_lea.hbm %s779_s1, %s365_s5  ;;  %s140_s16 = scalar_lea.vmem [#allocation5], %s641_s23 }
  0x30   : > { %p690_p12 = pnand %p788_p11, %p152_p9  ;;  %s147_s17 = sshll.u32 %s140_s16, 4  ;;  %s148_s17 = int_to_ptr.vmem [resolvable:$true] %s147_s17 }
  0x31   : > { %s138_s19 = scalar_lea.sflag [#allocation6], %s641_s23  ;;  %s463_s28 = scalar_lea.hbm %s697_s14, 16 }
  0x32   : > { %s789_s6 = scalar_select %p690_p12, 1, 0 }
  0x33   : > { %p464_p0 = scmp.ne.s32.totalorder %s697_s14, %s463_s28  ;;  %s468_s24 = scalar_lea.hbm %s779_s1, 32 }
  0x34   : > { %p469_p8 = scmp.lt.s32.totalorder %s697_s14, %s779_s1  ;;  %p470_p10 = scmp.lt.s32.totalorder %s468_s24, %s463_s28 }
  0x35   : > { %p466_p4 = pnand %p464_p0, %p437_p2 }
  0x36   : > { %p471_p1 = por %p470_p10, %p469_p8 }
  0x37   : > { %p467_p7 = pneg %p466_p4 }
  0x39   : > { %p472_p3 = pnand %p471_p1, %p467_p7 }
  0x3b   : > { %475 = shalt.err (!%p472_p3)
}
  0x3c   : > { %s476_s27 = scalar_lea.vmem %s148_s17, 16  ;;  %s565_s23 = smov [#allocation5]  }
  0x3d   : > { %p477_p5 = scmp.ne.s32.totalorder %s148_s17, %s476_s27  ;;  %s481_s29 = sshll.u32 %s565_s23, 4  ;;  %s482_s29 = int_to_ptr.vmem [resolvable:$false] %s481_s29 }
  0x3e   : > { %s483_s5 = scalar_lea.vmem %s482_s29, 32  ;;  %p484_p0 = scmp.lt.s32.totalorder %s148_s17, %s482_s29 }
  0x3f   : > { %p479_p9 = pnand %p477_p5, %p437_p2  ;;  %p485_p4 = scmp.lt.s32.totalorder %s483_s5, %s476_s27 }
  0x41   : > { %p480_p11 = pneg %p479_p9  ;;  %p486_p6 = por %p485_p4, %p484_p0 }
  0x43   : > { %p487_p12 = pnand %p486_p6, %p480_p11 }
  0x45   : > { %490 = shalt.err (!%p487_p12)
}
  0x46   : > { %383 = dma.hbm_to_vmem [thread:$0]  (!%p652_p13), %s697_s14, 16, %s148_s17, %s138_s19  }
  0x47   : > { %p790_p7 = scmp.ne.s32.totalorder %s789_s6, 0 }
  0x48   : > { %s722_s7 = sand.u32 (!%p790_p7), 1, %s551_s10   ;;  %p791_p2 = scmp.ne.s32.totalorder (!%p790_p7), %s784_s20, 0 }
  0x49   : > { %156 = sbr.rel (%p790_p7) target bundleno = 168 (0xa8), region = 28  ;;  %s367_s8 = sshll.u32 (!%p790_p7), %s722_s7, 5 }
  0x4a   : > { %s159_s16 = scalar_lea.sflag (!%p790_p7), [#allocation3], %s722_s7  ;;  %s162_s28 = scalar_lea.vmem (!%p790_p7), [#allocation2], %s367_s8 }
  0x4e   : > { %534 = dma.done.wait (%p791_p2), %s159_s16, 512  }
  0x4f   : > { %536 = vsyncadd (%p791_p2), %s159_s16, 4294966784  ;;  %s168_s3 = scalar_lea.sflag [#allocation6], %s722_s7  ;;  %s170_s6 = scalar_lea.vmem [#allocation5], %s722_s7 }
  0x50   : > { %538 = dma.done.wait (%p791_p2), %s168_s3, 16  }
  0x51   : > { %540 = vsyncadd (%p791_p2), %s168_s3, 4294967280  ;;  %v194_v0 = vld [vmem:[%s162_s28] sm:$0xff]  ;;  %v195_v1 = vld [vmem:[%s162_s28 + $0x8] sm:$0xff]  ;;  %v231_v11 = vlaneseq  ;;  %s193_s20 = scalar_lea.vmem [#allocation7], %s722_s7  ;;  %s368_s17 = sshll.u32 %s603_s13, 4 }
  0x52   : > { %v196_v2 = vld [vmem:[%s162_s28 + $0x10] sm:$0xff]  ;;  %v197_v3 = vld [vmem:[%s162_s28 + $0x18] sm:$0xff]  ;;  %v199_v4 = vmax.f32 %v194_v0, %v195_v1  ;;  %v198_v24 = vld [vmem:[%s170_s6] sm:$0x1]  ;;  %s274_s14 = sshll.u32 %s193_s20, 4  ;;  %s272_s4 = scalar_lea.hbm %s780_s2, %s368_s17  ;;  %s738_s14 = int_to_ptr.vmem [resolvable:$true] %s274_s14 }
  0x53   : > { %v200_v5 = vmax.f32 %v196_v2, %v197_v3  ;;  %v232_v14 = vshrl.u32 %v231_v11, 7  ;;  %vm258_vm4 = vcmp.ne.s32.totalorder %v198_v24, 4294967295  ;;  %s262_s24 = scalar_lea.sflag [#allocation4], %s722_s7  ;;  %s491_s25 = scalar_lea.vmem %s738_s14, 16 }
  0x54   : > { %p492_p6 = scmp.ne.s32.totalorder %s738_s14, %s491_s25  ;;  %p792_p13 = scmp.ne.s32.totalorder %s785_s21, 0 }
  0x55   : > { %v201_v6 = vmax.f32 %v199_v4, %v200_v5  ;;  %v238_v23 = vsub.s32 0, %v232_v14  ;;  %v233_v25 = vadd.s32 8, %v232_v14  ;;  %v234_v27 = vadd.s32 16, %v232_v14  ;;  %s566_s13 = smov [#allocation7]  }
  0x56   : > { %v235_v30 = vadd.s32 24, %v232_v14  ;;  %p493_p12 = pnand %p492_p6, %p792_p13  ;;  %s495_s26 = sshll.u32 %s566_s13, 4  ;;  %s496_s26 = int_to_ptr.vmem [resolvable:$false] %s495_s26 }
  0x57   : > { %v202_v7 = vrot.slane %v201_v6, 4  ;;  %v239_v26 = vrot.slane %v198_v24, %v238_v23  ;;  %s497_s27 = scalar_lea.vmem %s496_s26, 32  ;;  %p498_p10 = scmp.lt.s32.totalorder %s738_s14, %s496_s26 }
  0x58   : > { %p494_p8 = pneg %p493_p12  ;;  %p499_p1 = scmp.lt.s32.totalorder %s497_s27, %s491_s25 }
  0x59   : > { %v203_v8 = vmax.f32 %v201_v6, %v202_v7  ;;  %vm240_vm0 = vcmp.eq.s32.totalorder %v232_v14, %v239_v26  ;;  %vm241_vm1 = vcmp.eq.s32.totalorder %v233_v25, %v239_v26  ;;  %vm242_vm2 = vcmp.eq.s32.totalorder %v234_v27, %v239_v26 }
  0x5a   : > { %vm243_vm3 = vcmp.eq.s32.totalorder %v235_v30, %v239_v26  ;;  %p500_p3 = por %p499_p1, %p498_p10 }
  0x5b   : > { %v204_v9 = vrot.slane %v203_v8, 2 }
  0x5c   : > { %p501_p5 = pnand %p500_p3, %p494_p8 }
  0x5d   : > { %v205_v10 = vmax.f32 %v203_v8, %v204_v9 }
  0x5f   : > { %v206_v12 = vrot.slane %v205_v10, 1 }
  0x61   : > { %v207_v13 = vmax.f32 %v205_v10, %v206_v12 }
  0x63   : > { %v208_v15 = vsub.f32 %v194_v0, %v207_v13  ;;  %v209_v16 = vsub.f32 %v195_v1, %v207_v13  ;;  %v210_v17 = vsub.f32 %v196_v2, %v207_v13  ;;  %v211_v18 = vsub.f32 %v197_v3, %v207_v13 }
  0x65   : > { %v212_v19 = vmul.f32 1.442695, %v208_v15  ;;  %v214_v20 = vmul.f32 1.442695, %v209_v16  ;;  %v216_v21 = vmul.f32 1.442695, %v210_v17 }
  0x66   : > { %v218_v22 = vmul.f32 1.442695, %v211_v18  ;;  %v244_v28 = vsel %vm240_vm0, %v208_v15, 0.0  ;;  %v245_v29 = vsel %vm241_vm1, %v209_v16, 0.0  ;;  %v246_v34 = vsel %vm242_vm2, %v210_v17, 0.0 }
  0x67   : > { %425 = vpow2.f32 %v212_v19  ;;  %v248_v32 = vadd.f32 %v245_v29, %v244_v28  ;;  %v247_v40 = vsel %vm243_vm3, %v211_v18, 0.0 }
  0x68   : > { %427 = vpow2.f32 %v214_v20 }
  0x69   : > { %429 = vpow2.f32 %v216_v21  ;;  %v249_v39 = vadd.f32 %v248_v32, %v246_v34 }
  0x6a   : > { %431 = vpow2.f32 %v218_v22 }
  0x6b   : > { %v250_v43 = vadd.f32 %v249_v39, %v247_v40 }
  0x6d   : > { %v251_v46 = vrot.slane %v250_v43, 4 }
  0x6f   : > { %v252_v49 = vadd.f32 %v251_v46, %v250_v43 }
  0x71   : > { %v253_v51 = vrot.slane %v252_v49, 2 }
  0x73   : > { %v254_v52 = vadd.f32 %v253_v51, %v252_v49 }
  0x74   : > { %v426_v31 = vpop.eup %425 }
  0x75   : > { %v428_v33 = vpop.eup %427  ;;  %v255_v53 = vrot.slane %v254_v52, 1 }
  0x76   : > { %v430_v35 = vpop.eup %429  ;;  %v220_v36 = vadd.f32 %v428_v33, %v426_v31 }
  0x77   : > { %v432_v37 = vpop.eup %431  ;;  %v256_v54 = vadd.f32 %v255_v53, %v254_v52 }
  0x78   : > { %v221_v38 = vadd.f32 %v430_v35, %v220_v36 }
  0x7a   : > { %v222_v41 = vadd.f32 %v432_v37, %v221_v38 }
  0x7c   : > { %v223_v42 = vrot.slane %v222_v41, 4 }
  0x7e   : > { %v224_v44 = vadd.f32 %v223_v42, %v222_v41 }
  0x80   : > { %v225_v45 = vrot.slane %v224_v44, 2 }
  0x82   : > { %v226_v47 = vadd.f32 %v225_v45, %v224_v44 }
  0x84   : > { %v227_v48 = vrot.slane %v226_v47, 1 }
  0x86   : > { %v228_v50 = vadd.f32 %v227_v48, %v226_v47 }
  0x88   : > { %433 = vlog2.f32 %v228_v50 }
  0x95   : > { %v434_v55 = vpop.eup %433 }
  0x96   : > { %v230_v56 = vmul.f32 0.6931472, %v434_v55 }
  0x98   : > { %v257_v57 = vsub.f32 %v230_v56, %v256_v54 }
  0x9a   : > { %v259_v58 = vsel %vm258_vm4, %v257_v57, 0.0 }
  0x9b   : > { %260 = vst [vmem:[%s193_s20] sm:$0x1] %v259_v58 }
  0x9c   : > { %504 = shalt.err (!%p501_p5)
}
  0x9d   : > { %s505_s23 = scalar_lea.hbm %s272_s4, 16  ;;  %s509_s7 = scalar_lea.hbm %s780_s2, 32 }
  0x9e   : > { %p506_p9 = scmp.ne.s32.totalorder %s272_s4, %s505_s23  ;;  %p510_p4 = scmp.lt.s32.totalorder %s272_s4, %s780_s2 }
  0x9f   : > { %p511_p7 = scmp.lt.s32.totalorder %s509_s7, %s505_s23 }
  0xa0   : > { %p507_p11 = pnand %p506_p9, %p792_p13 }
  0xa1   : > { %p512_p2 = por %p511_p7, %p510_p4 }
  0xa2   : > { %p508_p0 = pneg %p507_p11 }
  0xa4   : > { %p513_p6 = pnand %p512_p2, %p508_p0 }
  0xa6   : > { %516 = shalt.err (!%p513_p6)
}
  0xa7   : > { %375 = dma.vmem_to_hbm [thread:$0]  (%p792_p13), %s738_s14, 16, %s272_s4, %s262_s24  }
  0xa8 PF: > { %s286_s28 = sand.u32 1, %s547_s9   ;;  %p793_p12 = scmp.ne.s32.totalorder %s786_s22, 0 }
  0xa9   : > { %p794_p8 = scmp.ge.s32.totalorder %s559_s12, 2  ;;  %s287_s3 = scalar_lea.sflag [#allocation4], %s286_s28 }
  0xab   : > { %p385_p10 = pnand %p794_p8, %p793_p12 }
  0xad   : > { %p386_p1 = pneg %p385_p10 }
  0xaf   : > { %542 = dma.done.wait (%p386_p1), %s287_s3, 16  }
  0xb0   : > { %544 = vsyncadd (%p386_p1), %s287_s3, 4294967280  ;;  %p18_p3 = scmp.ge.s32.totalorder %s607_s15, 4   ;;  %s795_s9 = smov %s551_s10 }
  0xb1   : > { %s796_s10 = smov %s555_s11  ;;  %s797_s11 = smov %s619_s18 }
  0xb2   : > { %s798_s12 = smov %s607_s15  ;;  %20 = sbr.rel (!%p18_p3) target bundleno = 7 (0x7), region = 86 }
  0xb7   :  { %291 = vsyncpa [#allocation3], 1 }
  0xb8   :  { %293 = vsyncpa [#allocation3 + $0x1], 1 }
  0xb9   :  { %294 = vsyncpa [#allocation6], 1 }
  0xba   :  { %296 = vsyncpa [#allocation6 + $0x1], 1 }
  0xbb   :  { %297 = vsyncpa [#allocation4], 1 }
  0xbc   :  { %299 = vsyncpa [#allocation4 + $0x1], 1 }

</bundles_post_ra>
